<compile_context>
chip_gen: v7x
topology: tpu7x:2x2x1
jax: 0.10.0
libtpu: 0.0.40
codegen_flags: <defaults>
</compile_context>

<pallas_src>
import jax
import jax.numpy as jnp
from jax import lax
from jax.experimental import pallas as pl
from jax.experimental.pallas import tpu as pltpu

BN_EPS = 1e-5
NORM_EPS = 1e-12  # F.normalize default eps


def _round_up(n, m):
    return ((n + m - 1) // m) * m


def make_stats_kernel(b_actual, tile_b, need_mask):
    """Pass 1: h = x @ w1 + b1 ; accumulate per-feature sum and sum-of-squares."""

    def kernel(x_ref, w1_ref, b1_ref, h_ref, sum_ref, sumsq_ref):
        i = pl.program_id(0)

        @pl.when(i == 0)
        def _init():
            sum_ref[...] = jnp.zeros_like(sum_ref)
            sumsq_ref[...] = jnp.zeros_like(sumsq_ref)

        # bf16 operands on the MXU, f32 accumulation.
        h = jnp.dot(x_ref[...], w1_ref[...],
                    preferred_element_type=jnp.float32) + b1_ref[...]
        h_ref[...] = h

        if need_mask:
            # Zero out contributions from padded batch rows.
            row = i * tile_b + lax.broadcasted_iota(jnp.int32, (tile_b, 1), 0)
            hm = jnp.where(row < b_actual, h, 0.0)
        else:
            hm = h

        sum_ref[...] += jnp.sum(hm, axis=0, keepdims=True)
        sumsq_ref[...] += jnp.sum(hm * hm, axis=0, keepdims=True)

    return kernel


def make_apply_kernel(b_actual):
    """Pass 2: BN (folded scale/shift) -> ReLU -> Linear2 -> L2 normalize."""
    inv_b = 1.0 / float(b_actual)

    def kernel(h_ref, sum_ref, sumsq_ref, gamma_ref, beta_ref,
               w2_ref, b2_ref, o_ref):
        # Batch statistics (biased variance), computed from f32 accumulators.
        mean = sum_ref[...] * inv_b                      # (1, D_h)
        var = sumsq_ref[...] * inv_b - mean * mean       # (1, D_h)

        # Fold BN into one multiply + one add per element.
        scale = gamma_ref[...] * lax.rsqrt(var + BN_EPS)
        shift = beta_ref[...] - mean * scale

        hr = jnp.maximum(h_ref[...] * scale + shift, 0.0)

        z = jnp.dot(hr.astype(jnp.bfloat16), w2_ref[...],
                    preferred_element_type=jnp.float32) + b2_ref[...]

        # F.normalize(z, dim=1): z / max(||z||, eps) == z * rsqrt(max(||z||^2, eps^2))
        ssq = jnp.sum(z * z, axis=1, keepdims=True)
        inv_norm = lax.rsqrt(jnp.maximum(ssq, NORM_EPS * NORM_EPS))
        o_ref[...] = (z * inv_norm).astype(o_ref.dtype)

    return kernel


def projection_forward(x, w1, b1, gamma, beta, w2, b2, *, tile_b=128):
    """Forward pass of the SimCLR Projection head.

    Weights are stored pre-transposed: w1 (D_in, D_h), w2 (D_h, D_out).
    """
    B, D_in = x.shape
    D_h = w1.shape[1]
    D_out = w2.shape[1]

    tb = min(tile_b, _round_up(B, 8))
    B_pad = _round_up(B, tb)
    num_tiles = B_pad // tb

    # bf16 MXU operands (weights + activations); biases / BN params stay f32.
    x_in = x.astype(jnp.bfloat16)
    if B_pad != B:
        x_in = jnp.pad(x_in, ((0, B_pad - B), (0, 0)))
    w1_in = w1.astype(jnp.bfloat16)
    w2_in = w2.astype(jnp.bfloat16)
    b1_in = jnp.asarray(b1, jnp.float32).reshape(1, D_h)
    gamma_in = jnp.asarray(gamma, jnp.float32).reshape(1, D_h)
    beta_in = jnp.asarray(beta, jnp.float32).reshape(1, D_h)
    b2_in = jnp.asarray(b2, jnp.float32).reshape(1, D_out)

    # --- Pass 1: hidden activations + BN statistics (accumulator over batch axis) ---
    h, bn_sum, bn_sumsq = pl.pallas_call(
        make_stats_kernel(B, tb, B_pad != B),
        grid=(num_tiles,),
        in_specs=[
            pl.BlockSpec((tb, D_in), lambda i: (i, 0)),
            pl.BlockSpec((D_in, D_h), lambda i: (0, 0)),
            pl.BlockSpec((1, D_h), lambda i: (0, 0)),
        ],
        out_specs=[
            pl.BlockSpec((tb, D_h), lambda i: (i, 0)),
            pl.BlockSpec((1, D_h), lambda i: (0, 0)),
            pl.BlockSpec((1, D_h), lambda i: (0, 0)),
        ],
        out_shape=[
            jax.ShapeDtypeStruct((B_pad, D_h), jnp.float32),
            jax.ShapeDtypeStruct((1, D_h), jnp.float32),
            jax.ShapeDtypeStruct((1, D_h), jnp.float32),
        ],
        compiler_params=pltpu.CompilerParams(
            dimension_semantics=("arbitrary",)),
    )(x_in, w1_in, b1_in)

    # --- Pass 2: BN apply + ReLU + Linear2 + L2-normalize (batch-parallel) ---
    out = pl.pallas_call(
        make_apply_kernel(B),
        grid=(num_tiles,),
        in_specs=[
            pl.BlockSpec((tb, D_h), lambda i: (i, 0)),
            pl.BlockSpec((1, D_h), lambda i: (0, 0)),
            pl.BlockSpec((1, D_h), lambda i: (0, 0)),
            pl.BlockSpec((1, D_h), lambda i: (0, 0)),
            pl.BlockSpec((1, D_h), lambda i: (0, 0)),
            pl.BlockSpec((D_h, D_out), lambda i: (0, 0)),
            pl.BlockSpec((1, D_out), lambda i: (0, 0)),
        ],
        out_specs=pl.BlockSpec((tb, D_out), lambda i: (i, 0)),
        out_shape=jax.ShapeDtypeStruct((B_pad, D_out), jnp.float32),
        compiler_params=pltpu.CompilerParams(
            dimension_semantics=("parallel",)),
    )(h, bn_sum, bn_sumsq, gamma_in, beta_in, w2_in, b2_in)

    return out[:B]


def projection_ref(x, w1, b1, gamma, beta, w2, b2):
    """Pure-JAX f32 reference (PyTorch training-mode BN semantics)."""
    h = x @ w1 + b1
    mean = jnp.mean(h, axis=0, keepdims=True)
    var = jnp.mean((h - mean) ** 2, axis=0, keepdims=True)
    hn = (h - mean) / jnp.sqrt(var + BN_EPS) * gamma + beta
    hr = jnp.maximum(hn, 0.0)
    z = hr @ w2 + b2
    norm = jnp.sqrt(jnp.sum(z * z, axis=1, keepdims=True))
    return z / jnp.maximum(norm, NORM_EPS)


if __name__ == "__main__":
    # Small shapes consistent with the module (input_dim -> hidden_dim -> output_dim),
    # B chosen to exercise the batch-tiled grid (two 128-row tiles).
    B, D_in, D_h, D_out = 256, 256, 256, 128

    key = jax.random.PRNGKey(0)
    kx, kw1, kb1, kw2, kb2, kg, kbeta = jax.random.split(key, 7)

    x = jax.random.normal(kx, (B, D_in), dtype=jnp.float32)

    # Linear weights stored pre-transposed: (in_features, out_features).
    w1 = jax.random.normal(kw1, (D_in, D_h), dtype=jnp.float32) * (1.0 / jnp.sqrt(D_in))
    b1 = jax.random.normal(kb1, (1, D_h), dtype=jnp.float32) * 0.01
    gamma = 1.0 + 0.1 * jax.random.normal(kg, (1, D_h), dtype=jnp.float32)
    beta = 0.1 * jax.random.normal(kbeta, (1, D_h), dtype=jnp.float32)
    w2 = jax.random.normal(kw2, (D_h, D_out), dtype=jnp.float32) * (1.0 / jnp.sqrt(D_h))
    b2 = jax.random.normal(kb2, (1, D_out), dtype=jnp.float32) * 0.01

    out = projection_forward(x, w1, b1, gamma, beta, w2, b2)
    out = jax.block_until_ready(out)

    ref = projection_ref(x, w1, b1, gamma, beta, w2, b2)
    assert out.shape == (B, D_out)
    # bf16 MXU operands -> loosened tolerance vs the f32 reference.
    assert jnp.allclose(out, ref, atol=5e-2, rtol=5e-2), "mismatch vs reference"
    # Rows must be L2-normalized (normalization happens in f32 inside the kernel).
    assert jnp.allclose(jnp.linalg.norm(out, axis=1), 1.0, atol=1e-3)

    print("KERNEL_OK")
</pallas_src>

<mosaic_0001>
module attributes {stable_mosaic.version = 11 : i64} {
  func.func @kernel(%arg0: i32, %arg1: memref<128x256xbf16, #tpu.memory_space<vmem>>, %arg2: memref<256x256xbf16, #tpu.memory_space<vmem>>, %arg3: memref<1x256xf32, #tpu.memory_space<vmem>>, %arg4: memref<128x256xf32, #tpu.memory_space<vmem>>, %arg5: memref<1x256xf32, #tpu.memory_space<vmem>>, %arg6: memref<1x256xf32, #tpu.memory_space<vmem>>) attributes {dimension_semantics = [#tpu.dimension_semantics<arbitrary>], iteration_bounds = array<i64: 2>, scalar_prefetch = 0 : i64, scratch_operands = 0 : i64, tpu.core_type = #tpu.core_type<tc>, window_params = [{transform_indices = @transform_0, window_bounds = array<i64: 128, 256>}, {pipeline_mode = #tpu.pipeline_mode<synchronous>, transform_indices = @transform_1, window_bounds = array<i64: 256, 256>}, {pipeline_mode = #tpu.pipeline_mode<synchronous>, transform_indices = @transform_2, window_bounds = array<i64: 1, 256>}, {transform_indices = @transform_3, window_bounds = array<i64: 128, 256>}, {pipeline_mode = #tpu.pipeline_mode<synchronous>, transform_indices = @transform_4, window_bounds = array<i64: 1, 256>}, {pipeline_mode = #tpu.pipeline_mode<synchronous>, transform_indices = @transform_5, window_bounds = array<i64: 1, 256>}]} {
    %c0_i32 = arith.constant 0 : i32
    %0 = arith.cmpi eq, %arg0, %c0_i32 : i32
    %1 = arith.extui %0 : i1 to i32
    %c0_i32_0 = arith.constant 0 : i32
    %2 = arith.cmpi ne, %1, %c0_i32_0 : i32
    scf.if %2 {
      %cst_18 = arith.constant 0.000000e+00 : f32
      %21 = vector.broadcast %cst_18 : f32 to vector<1x256xf32>
      %c0_19 = arith.constant 0 : index
      %c0_20 = arith.constant 0 : index
      %22 = vector.load %arg5[%c0_19, %c0_20] : memref<1x256xf32, #tpu.memory_space<vmem>>, vector<1x256xf32>
      tpu.vector_store %arg5[%c0_19, %c0_20], %21 {strides = array<i32>} : memref<1x256xf32, #tpu.memory_space<vmem>>, vector<1x256xf32>,
      %cst_21 = arith.constant 0.000000e+00 : f32
      %23 = vector.broadcast %cst_21 : f32 to vector<1x256xf32>
      %c0_22 = arith.constant 0 : index
      %c0_23 = arith.constant 0 : index
      %24 = vector.load %arg6[%c0_22, %c0_23] : memref<1x256xf32, #tpu.memory_space<vmem>>, vector<1x256xf32>
      tpu.vector_store %arg6[%c0_22, %c0_23], %23 {strides = array<i32>} : memref<1x256xf32, #tpu.memory_space<vmem>>, vector<1x256xf32>,
    } else {
    }
    %c0 = arith.constant 0 : index
    %c0_1 = arith.constant 0 : index
    %3 = vector.load %arg1[%c0, %c0_1] : memref<128x256xbf16, #tpu.memory_space<vmem>>, vector<128x256xbf16>
    %c0_2 = arith.constant 0 : index
    %c0_3 = arith.constant 0 : index
    %4 = vector.load %arg2[%c0_2, %c0_3] : memref<256x256xbf16, #tpu.memory_space<vmem>>, vector<256x256xbf16>
    %cst = arith.constant dense<0.000000e+00> : vector<128x256xf32>
    %5 = tpu.matmul %3, %4, %cst {dimension_numbers = #tpu.dot_dimension_numbers<[1], [0], [0], [1], [0, 0, 1, 1], [], []>} : vector<128x256xbf16>, vector<256x256xbf16>, vector<128x256xf32> -> vector<128x256xf32>
    %c0_4 = arith.constant 0 : index
    %c0_5 = arith.constant 0 : index
    %6 = vector.load %arg3[%c0_4, %c0_5] : memref<1x256xf32, #tpu.memory_space<vmem>>, vector<1x256xf32>
    %7 = vector.broadcast %6 : vector<1x256xf32> to vector<128x256xf32>
    %8 = arith.addf %5, %7 : vector<128x256xf32>
    %c0_6 = arith.constant 0 : index
    %c0_7 = arith.constant 0 : index
    %9 = vector.load %arg4[%c0_6, %c0_7] : memref<128x256xf32, #tpu.memory_space<vmem>>, vector<128x256xf32>
    tpu.vector_store %arg4[%c0_6, %c0_7], %8 {strides = array<i32>} : memref<128x256xf32, #tpu.memory_space<vmem>>, vector<128x256xf32>,
    %c0_8 = arith.constant 0 : index
    %c0_9 = arith.constant 0 : index
    %10 = vector.load %arg5[%c0_8, %c0_9] : memref<1x256xf32, #tpu.memory_space<vmem>>, vector<1x256xf32>
    %cst_10 = arith.constant dense<0.000000e+00> : vector<256xf32>
    %11 = vector.multi_reduction <add>, %8, %cst_10 [0] : vector<128x256xf32> to vector<256xf32>
    %12 = vector.shape_cast %11 : vector<256xf32> to vector<1x256xf32>
    %13 = arith.addf %10, %12 : vector<1x256xf32>
    %c0_11 = arith.constant 0 : index
    %c0_12 = arith.constant 0 : index
    %14 = vector.load %arg5[%c0_11, %c0_12] : memref<1x256xf32, #tpu.memory_space<vmem>>, vector<1x256xf32>
    tpu.vector_store %arg5[%c0_11, %c0_12], %13 {strides = array<i32>} : memref<1x256xf32, #tpu.memory_space<vmem>>, vector<1x256xf32>,
    %c0_13 = arith.constant 0 : index
    %c0_14 = arith.constant 0 : index
    %15 = vector.load %arg6[%c0_13, %c0_14] : memref<1x256xf32, #tpu.memory_space<vmem>>, vector<1x256xf32>
    %16 = arith.mulf %8, %8 : vector<128x256xf32>
    %cst_15 = arith.constant dense<0.000000e+00> : vector<256xf32>
    %17 = vector.multi_reduction <add>, %16, %cst_15 [0] : vector<128x256xf32> to vector<256xf32>
    %18 = vector.shape_cast %17 : vector<256xf32> to vector<1x256xf32>
    %19 = arith.addf %15, %18 : vector<1x256xf32>
    %c0_16 = arith.constant 0 : index
    %c0_17 = arith.constant 0 : index
    %20 = vector.load %arg6[%c0_16, %c0_17] : memref<1x256xf32, #tpu.memory_space<vmem>>, vector<1x256xf32>
    tpu.vector_store %arg6[%c0_16, %c0_17], %19 {strides = array<i32>} : memref<1x256xf32, #tpu.memory_space<vmem>>, vector<1x256xf32>,
    return
  }
  func.func @transform_0(%arg0: i32) -> (i32, i32) {
    %c0_i32 = arith.constant 0 : i32
    %c0_i32_0 = arith.constant 0 : i32
    return %arg0, %c0_i32 : i32, i32
  }
  func.func @transform_1(%arg0: i32) -> (i32, i32) {
    %c0_i32 = arith.constant 0 : i32
    %c0_i32_0 = arith.constant 0 : i32
    %c0_i32_1 = arith.constant 0 : i32
    return %c0_i32, %c0_i32_0 : i32, i32
  }
  func.func @transform_2(%arg0: i32) -> (i32, i32) {
    %c0_i32 = arith.constant 0 : i32
    %c0_i32_0 = arith.constant 0 : i32
    %c0_i32_1 = arith.constant 0 : i32
    return %c0_i32, %c0_i32_0 : i32, i32
  }
  func.func @transform_3(%arg0: i32) -> (i32, i32) {
    %c0_i32 = arith.constant 0 : i32
    %c0_i32_0 = arith.constant 0 : i32
    return %arg0, %c0_i32 : i32, i32
  }
  func.func @transform_4(%arg0: i32) -> (i32, i32) {
    %c0_i32 = arith.constant 0 : i32
    %c0_i32_0 = arith.constant 0 : i32
    %c0_i32_1 = arith.constant 0 : i32
    return %c0_i32, %c0_i32_0 : i32, i32
  }
  func.func @transform_5(%arg0: i32) -> (i32, i32) {
    %c0_i32 = arith.constant 0 : i32
    %c0_i32_0 = arith.constant 0 : i32
    %c0_i32_1 = arith.constant 0 : i32
    return %c0_i32, %c0_i32_0 : i32, i32
  }
}

</mosaic_0001>

<bundles_post_ra>
// kernel: tpu_custom_call.1
= control target key start
LH: loop header
LB: loop body
LE: loop exit
PB: predicated region body
PF: predicated region fallthrough
CT: control target
= control target key end

     0   :  { %11 = vsyncpa [#allocation3], 0  ;;  %s1959_s0 = inlined_call_operand.hbm [shape: bf16[256,256], index: 0, kind: input, shape index: {}]   ;;  %s1960_s1 = inlined_call_operand.hbm [shape: bf16[256,256], index: 1, kind: input, shape index: {}]   ;;  %s1961_s2 = inlined_call_operand.vmem [shape: f32[1,256], index: 2, kind: input, shape index: {}]   ;;  %s1962_s3 = inlined_call_operand.hbm [shape: f32[256,256], index: 3, kind: output, shape index: {0}]   ;;  %s1963_s4 = inlined_call_operand.hbm [shape: f32[1,256], index: 4, kind: output, shape index: {1}]   ;;  %s1964_s5 = inlined_call_operand.hbm [shape: f32[1,256], index: 5, kind: output, shape index: {2}]  }
   0x1   :  { %13 = vsyncpa [#allocation3 + $0x1], 0 }
   0x2   :  { %14 = vsyncpa [#allocation6], 0 }
   0x3   :  { %15 = vsyncpa [#allocation4], 0 }
   0x4   :  { %17 = vsyncpa [#allocation4 + $0x1], 0 }
   0x5   :  { %18 = vsyncpa [#allocation9], 0  ;;  %s1498_s18 = smov 0   ;;  %s1500_s19 = smov 0  }
   0x6   :  { %s1502_s20 = smov 0   ;;  %s1504_s21 = smov 0  }
   0x7 LB: > { %s1519_s22 = sadd.s32 4294967295, %s1455_s21   ;;  %s1015_s23 = sadd.s32 4294967294, %s1455_s21   ;;  %s1455_s21 = sphi %s1504_s21, %s1994_s21   ;;  %s1451_s20 = sphi %s1502_s20, %s1993_s20   ;;  %s1447_s19 = sphi %s1500_s19, %s1992_s19   ;;  %s1443_s18 = sphi %s1498_s18, %s1991_s18  }
   0x8   : > { %p44_p0 = scmp.ne.s32.totalorder %s1447_s19, %s1443_s18  ;;  %p1965_p1 = scmp.eq.s32.totalorder %s1519_s22, 0 }
   0x9   : > { %p116_p3 = scmp.eq.s32.totalorder %s1015_s23, 1  ;;  %p1016_p5 = scmp.ge.s32.totalorder %s1455_s21, 1 }
   0xa   : > { %p1528_p4 = por %p1965_p1, %p44_p0  ;;  %p165_p7 = scmp.lt.s32.totalorder %s1455_s21, 3 }
   0xb   : > { %p1533_p6 = por %p116_p3, %p44_p0  ;;  %s1457_s27 = smov [#allocation5]  }
   0xc   : > { %s1968_s24 = scalar_select %p1528_p4, 1, 0 }
   0xd   : > { %s1969_s25 = scalar_select %p1533_p6, 1, 0 }
   0xe   : > { %p1539_p9 = pnand %p1016_p5, %p165_p7  ;;  %s177_s28 = sshll.u32 %s1457_s27, 4  ;;  %s1543_s28 = int_to_ptr.vmem [resolvable:$true] %s177_s28 }
   0xf   : > { %s1555_s30 = sadd.s32 1, %s1455_s21   ;;  %s31_s6 = sadd.s32 1, %s1451_s20 }
  0x10   : > { %s1970_s26 = scalar_select %p1539_p9, 1, 0 }
  0x11   : > { %p1138_p10 = pneg %p1539_p9  ;;  %s28_s7 = ssub.s32 %s1455_s21, %s1555_s30 }
  0x12   : > { %s1271_s10 = scalar_lea.hbm %s1960_s1, 4096 }
  0x13   : > { %p1550_p12 = pnand %p1138_p10, %p1965_p1  ;;  %p1272_p13 = scmp.ne.s32.totalorder %s1960_s1, %s1271_s10 }
  0x14   : > { %p1278_p7 = scmp.lt.u32.totalorder %s1271_s10, %s1960_s1 }
  0x15   : > { %p1273_p0 = pneg %p1550_p12 }
  0x17   : > { %p1274_p3 = pnand %p1273_p0, %p1272_p13 }
  0x19   : > { %p1275_p5 = pneg %p1274_p3 }
  0x1b   : > { %p1280_p10 = pnand %p1278_p7, %p1275_p5 }
  0x1d   : > { %1283 = shalt.err (!%p1280_p10)
}
  0x1e   : > { %s1284_s15 = scalar_lea.vmem %s1543_s28, 4096  ;;  %p1292_p2 = scmp.lt.s32.totalorder %s1543_s28, %s1543_s28 }
  0x1f   : > { %p1285_p11 = scmp.ne.s32.totalorder %s1543_s28, %s1284_s15  ;;  %p1293_p6 = scmp.lt.s32.totalorder %s1284_s15, %s1284_s15 }
  0x21   : > { %p1287_p8 = pnand %p1285_p11, %p1273_p0  ;;  %p1294_p4 = por %p1293_p6, %p1292_p2 }
  0x23   : > { %p1288_p1 = pneg %p1287_p8 }
  0x25   : > { %p1295_p9 = pnand %p1294_p4, %p1288_p1 }
  0x27   : > { %1298 = shalt.err (!%p1295_p9)
}
  0x28   : > { %s1458_s16 = smov 128   ;;  %s1459_s17 = smov 8  }
  0x29   : > { %1141 = dma.hbm_to_vmem [thread:$0]  (!%p1550_p12), %s1960_s1, 4096, %s1543_s28, [#allocation6], %s1458_s16, %s1458_s16, %s1459_s17  }
  0x2a   : > { %p29_p1 = scmp.eq.s32.totalorder %s28_s7, 0  ;;  %p38_p2 = scmp.ne.s32.totalorder %s1451_s20, %s1447_s19 }
  0x2b   : > { %p39_p4 = scmp.eq.s32.totalorder %s1455_s21, 0  ;;  %p1151_p6 = scmp.lt.s32.totalorder %s1455_s21, 2 }
  0x2c   : > { %s1589_s8 = scalar_select %p29_p1, %s1451_s20, %s31_s6  }
  0x2d   : > { %p40_p8 = por %p39_p4, %p38_p2  ;;  %p1972_p9 = scmp.eq.s32.totalorder %s1519_s22, 1 }
  0x2e   : > { %s194_s29 = sand.u32 1, %s1451_s20   ;;  %s1087_s10 = sshll.u32 %s1455_s21, 11 }
  0x2f   : > { %p1593_p11 = por %p1972_p9, %p38_p2  ;;  %s1019_s11 = sshll.u32 %s194_s29, 7 }
  0x30   : > { %s1602_s14 = scalar_lea.hbm %s1959_s0, %s1087_s10  ;;  %s198_s28 = scalar_lea.vmem [#allocation2], %s1019_s11 }
  0x31   : > { %s206_s6 = sshll.u32 %s198_s28, 4  ;;  %p1604_p12 = pnand %p1151_p6, %p40_p8  ;;  %s1608_s6 = int_to_ptr.vmem [resolvable:$true] %s206_s6 }
  0x32   : > { %s1610_s15 = scalar_lea.sflag [#allocation3], %s194_s29  ;;  %s1299_s23 = scalar_lea.hbm %s1602_s14, 2048 }
  0x33   : > { %p1300_p13 = scmp.ne.s32.totalorder %s1602_s14, %s1299_s23  ;;  %p1301_p0 = pneg %p1604_p12 }
  0x34   : > { %s1304_s11 = scalar_lea.hbm %s1959_s0, 4096  ;;  %p1305_p7 = scmp.lt.u32.totalorder %s1602_s14, %s1959_s0 }
  0x35   : > { %p1302_p3 = pnand %p1301_p0, %p1300_p13  ;;  %p1306_p10 = scmp.lt.u32.totalorder %s1304_s11, %s1299_s23 }
  0x36   : > { %p1308_p2 = scmp.lt.u32.totalorder %s1299_s23, %s1602_s14 }
  0x37   : > { %p1303_p5 = pneg %p1302_p3  ;;  %p1307_p1 = por %p1306_p10, %p1305_p7 }
  0x39   : > { %p1309_p4 = por %p1308_p2, %p1307_p1 }
  0x3b   : > { %p1310_p6 = pnand %p1309_p4, %p1303_p5 }
  0x3d   : > { %1313 = shalt.err (!%p1310_p6)
}
  0x3e   : > { %s1314_s29 = scalar_lea.vmem %s1608_s6, 2048  ;;  %s1460_s28 = smov [#allocation2]  }
  0x3f   : > { %p1315_p8 = scmp.ne.s32.totalorder %s1608_s6, %s1314_s29  ;;  %s1319_s27 = sshll.u32 %s1460_s28, 4  ;;  %s1320_s27 = int_to_ptr.vmem [resolvable:$false] %s1319_s27 }
  0x40   : > { %s1321_s10 = scalar_lea.vmem %s1320_s27, 4096  ;;  %p1322_p3 = scmp.lt.s32.totalorder %s1608_s6, %s1320_s27 }
  0x41   : > { %p1317_p9 = pnand %p1315_p8, %p1301_p0  ;;  %p1323_p7 = scmp.lt.s32.totalorder %s1321_s10, %s1314_s29 }
  0x43   : > { %p1318_p13 = pneg %p1317_p9  ;;  %p1324_p10 = por %p1323_p7, %p1322_p3 }
  0x45   : > { %p1325_p1 = pnand %p1324_p10, %p1318_p13 }
  0x47   : > { %1328 = shalt.err (!%p1325_p1)
}
  0x48   : > { %1145 = dma.hbm_to_vmem [thread:$0]  (!%p1604_p12), %s1602_s14, 2048, %s1608_s6, %s1610_s15, %s1458_s16, %s1458_s16, %s1459_s17  }
  0x49   : > { %p1975_p0 = scmp.ne.s32.totalorder %s1970_s26, 0 }
  0x4a   : > { %s1644_s23 = sand.u32 (!%p1975_p0), 1, %s1447_s19   ;;  %p1976_p5 = scmp.ne.s32.totalorder (!%p1975_p0), %s1968_s24, 0 }
  0x4b   : > { %218 = sbr.rel (%p1975_p0) target bundleno = 490 (0x1ea), region = 32  ;;  %s1024_s11 = sshll.u32 (!%p1975_p0), %s1644_s23, 7 }
  0x4c   : > { %s221_s12 = scalar_lea.sflag (!%p1975_p0), [#allocation3], %s1644_s23  ;;  %s1648_s13 = scalar_lea.vmem (!%p1975_p0), [#allocation2], %s1024_s11 }
  0x52   : > { %1426 = dma.done.wait (%p1976_p5), %s221_s12, 2048  }
  0x53   : > { %1428 = vsyncadd (%p1976_p5), %s221_s12, 4294965248  ;;  %p1977_p12 = scmp.eq.s32.totalorder %s1519_s22, 0 }
  0x55   : > { %1430 = dma.done.wait (%p1977_p12), [#allocation6], 4096   ;;  %p1978_p2 = pmov %p1977_p12 }
  0x56   : > { %s1026_s26 = sshll.u32 %s1644_s23, 8  ;;  %p1979_p4 = scmp.ne.s32.totalorder %s1519_s22, 0 }
  0x57   : > { %1432 = vsyncadd (%p1978_p2), [#allocation6], 4294963200  ;;  %s1659_s16 = scalar_lea.vmem [#allocation7], %s1026_s26  ;;  %v261_v0 = vlaneseq (!%p1979_p4)  ;;  %v1461_v1 = vmov (!%p1979_p4), 0.0  }
  0x58   : > { %260 = sbr.rel (%p1979_p4) target bundleno = 95 (0x5f), region = 44 }
  0x59   : > { %vm263_vm0 = vcmp.lt.s32.totalorder (!%p1979_p4), %v261_v0, 256 }
  0x5a   : > { %265 = vst.msk [vmem:[#allocation8] sm:$0x3] (!%p1979_p4), %vm263_vm0, %v1461_v1  ;;  %266 = vst.msk [vmem:[#allocation10] sm:$0x3] (!%p1979_p4), %vm263_vm0, %v1461_v1 }
  0x5f PF: > { %v1199_v2 = vld [vmem:[#allocation5 + $0x4] ss:$8 sps:$4 sm:$0xff]   ;;  %v1201_v3 = vld [vmem:[#allocation5] ss:$8 sps:$4 sm:$0xff]   ;;  %v1202_v4 = vld [vmem:[#allocation5 + $0x14] ss:$8 sps:$4 sm:$0xff]   ;;  %v317_v50 = vlaneseq }
  0x60   : > { %567 = vmatprep.subr.bf16.mxu0 %v1199_v2  ;;  %1090 = vmatprep.subr.bf16.mxu1 %v1199_v2  ;;  %v1204_v5 = vld [vmem:[#allocation5 + $0x10] ss:$8 sps:$4 sm:$0xff]   ;;  %v1205_v6 = vld [vmem:[#allocation5 + $0x24] ss:$8 sps:$4 sm:$0xff]   ;;  %v1207_v7 = vld [vmem:[#allocation5 + $0x20] ss:$8 sps:$4 sm:$0xff]  }
  0x61   : > { %568 = vmatpush1.bf16.msra.mxu0 %v1201_v3  ;;  %1106 = vmatpush1.bf16.msra.mxu1 %v1201_v3  ;;  %v1208_v8 = vld [vmem:[#allocation5 + $0x34] ss:$8 sps:$4 sm:$0xff]   ;;  %v1210_v9 = vld [vmem:[#allocation5 + $0x30] ss:$8 sps:$4 sm:$0xff]   ;;  %v1211_v10 = vld [vmem:[#allocation5 + $0x44] ss:$8 sps:$4 sm:$0xff]  }
  0x62   : > { %569 = vmatprep.subr.bf16.mxu0 %v1202_v4  ;;  %1091 = vmatprep.subr.bf16.mxu1 %v1202_v4  ;;  %v1213_v11 = vld [vmem:[#allocation5 + $0x40] ss:$8 sps:$4 sm:$0xff]   ;;  %v1214_v12 = vld [vmem:[#allocation5 + $0x54] ss:$8 sps:$4 sm:$0xff]   ;;  %v1216_v13 = vld [vmem:[#allocation5 + $0x50] ss:$8 sps:$4 sm:$0xff]  }
  0x63   : > { %v1217_v14 = vld [vmem:[#allocation5 + $0x64] ss:$8 sps:$4 sm:$0xff]   ;;  %v1219_v16 = vld [vmem:[#allocation5 + $0x60] ss:$8 sps:$4 sm:$0xff]   ;;  %v1220_v17 = vld [vmem:[#allocation5 + $0x74] ss:$8 sps:$4 sm:$0xff]  }
  0x64   : > { %v1249_v15 = vld [vmem:[%s1648_s13 + $0x4] ss:$8 sps:$4 sm:$0xff]   ;;  %v1222_v19 = vld [vmem:[#allocation5 + $0x70] ss:$8 sps:$4 sm:$0xff]   ;;  %v1225_v21 = vld [vmem:[#allocation5 + $0x80] ss:$8 sps:$4 sm:$0xff]  }
  0x65   : > { %570 = vmatpush1.bf16.msra.mxu0 %v1204_v5  ;;  %1107 = vmatpush1.bf16.msra.mxu1 %v1204_v5  ;;  %v1255_v18 = vld [vmem:[%s1648_s13 + $0x44] ss:$8 sps:$4 sm:$0xff]   ;;  %v1226_v22 = vld [vmem:[#allocation5 + $0x94] ss:$8 sps:$4 sm:$0xff]   ;;  %v1228_v23 = vld [vmem:[#allocation5 + $0x90] ss:$8 sps:$4 sm:$0xff]  }
  0x66   : > { %571 = vmatprep.subr.bf16.mxu0 %v1205_v6  ;;  %1092 = vmatprep.subr.bf16.mxu1 %v1205_v6  ;;  %v1223_v20 = vld [vmem:[#allocation5 + $0x84] ss:$8 sps:$4 sm:$0xff]   ;;  %v1231_v25 = vld [vmem:[#allocation5 + $0xa0] ss:$8 sps:$4 sm:$0xff]   ;;  %v1232_v26 = vld [vmem:[#allocation5 + $0xb4] ss:$8 sps:$4 sm:$0xff]  }
  0x67   : > { %599 = vmatprep.mubr.bf16.mxu0 %v1249_v15  ;;  %639 = vmatprep.mubr.bf16.mxu1 %v1255_v18  ;;  %v1229_v24 = vld [vmem:[#allocation5 + $0xa4] ss:$8 sps:$4 sm:$0xff]   ;;  %v1234_v27 = vld [vmem:[#allocation5 + $0xb0] ss:$8 sps:$4 sm:$0xff]   ;;  %v1237_v29 = vld [vmem:[#allocation5 + $0xc0] ss:$8 sps:$4 sm:$0xff]  }
  0x68   : > { %v1235_v28 = vld [vmem:[#allocation5 + $0xc4] ss:$8 sps:$4 sm:$0xff]   ;;  %v1238_v30 = vld [vmem:[#allocation5 + $0xd4] ss:$8 sps:$4 sm:$0xff]   ;;  %v1240_v31 = vld [vmem:[#allocation5 + $0xd0] ss:$8 sps:$4 sm:$0xff]  }
  0x69   : > { %572 = vmatpush1.bf16.msra.mxu0 %v1207_v7  ;;  %1108 = vmatpush1.bf16.msra.mxu1 %v1207_v7  ;;  %v1241_v32 = vld [vmem:[#allocation5 + $0xe4] ss:$8 sps:$4 sm:$0xff]   ;;  %v1243_v33 = vld [vmem:[#allocation5 + $0xe0] ss:$8 sps:$4 sm:$0xff]   ;;  %v1244_v34 = vld [vmem:[#allocation5 + $0xf4] ss:$8 sps:$4 sm:$0xff]  }
  0x6a   : > { %573 = vmatprep.subr.bf16.mxu0 %v1208_v8  ;;  %1093 = vmatprep.subr.bf16.mxu1 %v1208_v8  ;;  %v1246_v35 = vld [vmem:[#allocation5 + $0xf0] ss:$8 sps:$4 sm:$0xff]   ;;  %v1247_v36 = vld [vmem:[%s1648_s13] ss:$8 sps:$4 sm:$0xff]   ;;  %v1250_v38 = vld [vmem:[%s1648_s13 + $0x14] ss:$8 sps:$4 sm:$0xff]  }
  0x6b   : > { %v1253_v37 = vld [vmem:[%s1648_s13 + $0x40] ss:$8 sps:$4 sm:$0xff]   ;;  %v1259_v39 = vld [vmem:[%s1648_s13 + $0x54] ss:$8 sps:$4 sm:$0xff]   ;;  %v1252_v40 = vld [vmem:[%s1648_s13 + $0x10] ss:$8 sps:$4 sm:$0xff]  }
  0x6c   : > { %v1261_v41 = vld [vmem:[%s1648_s13 + $0x50] ss:$8 sps:$4 sm:$0xff]   ;;  %v1256_v42 = vld [vmem:[%s1648_s13 + $0x24] ss:$8 sps:$4 sm:$0xff]   ;;  %v1258_v44 = vld [vmem:[%s1648_s13 + $0x20] ss:$8 sps:$4 sm:$0xff]  }
  0x6d   : > { %574 = vmatpush1.bf16.msra.mxu0 %v1210_v9  ;;  %1109 = vmatpush1.bf16.msra.mxu1 %v1210_v9  ;;  %v1265_v43 = vld [vmem:[%s1648_s13 + $0x64] ss:$8 sps:$4 sm:$0xff]   ;;  %v1267_v45 = vld [vmem:[%s1648_s13 + $0x60] ss:$8 sps:$4 sm:$0xff]   ;;  %v1262_v46 = vld [vmem:[%s1648_s13 + $0x34] ss:$8 sps:$4 sm:$0xff]  }
  0x6e   : > { %575 = vmatprep.subr.bf16.mxu0 %v1211_v10  ;;  %1094 = vmatprep.subr.bf16.mxu1 %v1211_v10  ;;  %v1268_v47 = vld [vmem:[%s1648_s13 + $0x74] ss:$8 sps:$4 sm:$0xff]   ;;  %v1264_v48 = vld [vmem:[%s1648_s13 + $0x30] ss:$8 sps:$4 sm:$0xff]   ;;  %v1680_v51 = vshrl.u32 %v317_v50, 7  ;;  %s1089_s14 = sshll.u32 %s1519_s22, 12 }
  0x6f   : > { %v1270_v49 = vld [vmem:[%s1648_s13 + $0x70] ss:$8 sps:$4 sm:$0xff]   ;;  %v315_v53 = vld [vmem:[%s1961_s2] sm:$0x3]  ;;  %s889_s6 = sshll.u32 %s1659_s16, 4  ;;  %s1800_s29 = scalar_lea.hbm %s1962_s3, %s1089_s14  ;;  %s1802_s6 = int_to_ptr.vmem [resolvable:$true] %s889_s6 }
  0x70   : > { %v319_v52 = vsub.s32 0, %v1680_v51  ;;  %v323_v54 = vsub.s32 1, %v1680_v51  ;;  %s875_s28 = scalar_lea.sflag [#allocation4], %s1644_s23  ;;  %s1329_s27 = scalar_lea.vmem %s1802_s6, 4096 }
  0x71   : > { %576 = vmatpush1.bf16.msra.mxu0 %v1213_v11  ;;  %1110 = vmatpush1.bf16.msra.mxu1 %v1213_v11  ;;  %p1330_p6 = scmp.ne.s32.totalorder %s1802_s6, %s1329_s27  ;;  %s1462_s10 = smov [#allocation7]  }
  0x72   : > { %577 = vmatprep.subr.bf16.mxu0 %v1214_v12  ;;  %1095 = vmatprep.subr.bf16.mxu1 %v1214_v12  ;;  %v1687_v55 = vrot.slane %v315_v53, %v319_v52  ;;  %v1689_v56 = vrot.slane %v315_v53, %v323_v54  ;;  %s1333_s11 = sshll.u32 %s1462_s10, 4  ;;  %s1334_s11 = int_to_ptr.vmem [resolvable:$false] %s1333_s11 }
  0x73   : > { %p1331_p8 = pnand %p1330_p6, %p1593_p11  ;;  %s1335_s12 = scalar_lea.vmem %s1334_s11, 8192 }
  0x74   : > { %p1336_p13 = scmp.lt.s32.totalorder %s1802_s6, %s1334_s11  ;;  %p1337_p3 = scmp.lt.s32.totalorder %s1335_s12, %s1329_s27 }
  0x75   : > { %578 = vmatpush1.bf16.msra.mxu0 %v1216_v13  ;;  %1111 = vmatpush1.bf16.msra.mxu1 %v1216_v13  ;;  %p1332_p9 = pneg %p1331_p8 }
  0x76   : > { %579 = vmatprep.subr.bf16.mxu0 %v1217_v14  ;;  %1096 = vmatprep.subr.bf16.mxu1 %v1217_v14  ;;  %p1338_p7 = por %p1337_p3, %p1336_p13 }
  0x78   : > { %p1339_p10 = pnand %p1338_p7, %p1332_p9 }
  0x79   : > { %580 = vmatpush1.bf16.msra.mxu0 %v1219_v16  ;;  %1112 = vmatpush1.bf16.msra.mxu1 %v1219_v16 }
  0x7a   : > { %581 = vmatprep.subr.bf16.mxu0 %v1220_v17  ;;  %1097 = vmatprep.subr.bf16.mxu1 %v1220_v17 }
  0x7d   : > { %582 = vmatpush1.bf16.msra.mxu0 %v1222_v19  ;;  %1113 = vmatpush1.bf16.msra.mxu1 %v1222_v19 }
  0x7e   : > { %583 = vmatprep.subr.bf16.mxu0 %v1223_v20  ;;  %1098 = vmatprep.subr.bf16.mxu1 %v1223_v20 }
  0x81   : > { %584 = vmatpush1.bf16.msra.mxu0 %v1225_v21  ;;  %1114 = vmatpush1.bf16.msra.mxu1 %v1225_v21 }
  0x82   : > { %585 = vmatprep.subr.bf16.mxu0 %v1226_v22  ;;  %1099 = vmatprep.subr.bf16.mxu1 %v1226_v22 }
  0x85   : > { %586 = vmatpush1.bf16.msra.mxu0 %v1228_v23  ;;  %1115 = vmatpush1.bf16.msra.mxu1 %v1228_v23 }
  0x86   : > { %587 = vmatprep.subr.bf16.mxu0 %v1229_v24  ;;  %1100 = vmatprep.subr.bf16.mxu1 %v1229_v24 }
  0x89   : > { %588 = vmatpush1.bf16.msra.mxu0 %v1231_v25  ;;  %1116 = vmatpush1.bf16.msra.mxu1 %v1231_v25 }
  0x8a   : > { %589 = vmatprep.subr.bf16.mxu0 %v1232_v26  ;;  %1101 = vmatprep.subr.bf16.mxu1 %v1232_v26 }
  0x8d   : > { %590 = vmatpush1.bf16.msra.mxu0 %v1234_v27  ;;  %1117 = vmatpush1.bf16.msra.mxu1 %v1234_v27 }
  0x8e   : > { %591 = vmatprep.subr.bf16.mxu0 %v1235_v28  ;;  %1102 = vmatprep.subr.bf16.mxu1 %v1235_v28 }
  0x91   : > { %592 = vmatpush1.bf16.msra.mxu0 %v1237_v29  ;;  %1118 = vmatpush1.bf16.msra.mxu1 %v1237_v29 }
  0x92   : > { %593 = vmatprep.subr.bf16.mxu0 %v1238_v30  ;;  %1103 = vmatprep.subr.bf16.mxu1 %v1238_v30 }
  0x95   : > { %594 = vmatpush1.bf16.msra.mxu0 %v1240_v31  ;;  %1119 = vmatpush1.bf16.msra.mxu1 %v1240_v31 }
  0x96   : > { %595 = vmatprep.subr.bf16.mxu0 %v1241_v32  ;;  %1104 = vmatprep.subr.bf16.mxu1 %v1241_v32 }
  0x99   : > { %596 = vmatpush1.bf16.msra.mxu0 %v1243_v33  ;;  %1120 = vmatpush1.bf16.msra.mxu1 %v1243_v33 }
  0x9a   : > { %597 = vmatprep.subr.bf16.mxu0 %v1244_v34  ;;  %1105 = vmatprep.subr.bf16.mxu1 %v1244_v34 }
  0x9d   : > { %598 = vmatpush1.bf16.msra.mxu0 %v1246_v35  ;;  %1121 = vmatpush1.bf16.msra.mxu1 %v1246_v35 }
  0xa0   : > { %600 = vmatmul.mubr.bf16.vlgmr.msra.gmra.mrb[0].mxu0 %v1247_v36  ;;  %640 = vmatmul.mubr.bf16.vlgmr.msra.gmra.mrb[0].mxu1 %v1253_v37 }
  0xa1   : > { %609 = vmatprep.mubr.bf16.mxu0 %v1250_v38  ;;  %649 = vmatprep.mubr.bf16.mxu1 %v1259_v39 }
  0xa8   : > { %610 = vmatmul.mubr.bf16.gmra.mrb[4].mxu0 %v1252_v40  ;;  %650 = vmatmul.mubr.bf16.gmra.mrb[4].mxu1 %v1261_v41 }
  0xa9   : > { %619 = vmatprep.mubr.bf16.mxu0 %v1256_v42  ;;  %659 = vmatprep.mubr.bf16.mxu1 %v1265_v43 }
  0xb0   : > { %620 = vmatmul.mubr.bf16.gmra.mrb[8].mxu0 %v1258_v44  ;;  %660 = vmatmul.mubr.bf16.gmra.mrb[8].mxu1 %v1267_v45 }
  0xb1   : > { %629 = vmatprep.mubr.bf16.mxu0 %v1262_v46  ;;  %669 = vmatprep.mubr.bf16.mxu1 %v1268_v47 }
  0xb8   : > { %630 = vmatmul.mubr.bf16.gmra.mrb[12].mxu0 %v1264_v48  ;;  %670 = vmatmul.mubr.bf16.gmra.mrb[12].mxu1 %v1270_v49 }
 0x173   : > { %v601_v57 = vpop.f32.mrb[0].mxu0  ;;  %v641_v58 = vpop.f32.mrb[0].mxu1 }
 0x174   : > { %v602_v59 = vadd.f32 %v601_v57, %v1687_v55  ;;  %v603_v60 = vpop.f32.mrb[1].mxu0  ;;  %v1693_v61 = vadd.f32 %v641_v58, %v1687_v55  ;;  %v643_v62 = vpop.f32.mrb[1].mxu1 }
 0x175   : > { %v604_v63 = vadd.f32 %v603_v60, %v1689_v56  ;;  %v605_v0 = vpop.f32.mrb[2].mxu0  ;;  %v1697_v1 = vadd.f32 %v643_v62, %v1689_v56  ;;  %v645_v2 = vpop.f32.mrb[2].mxu1 }
 0x176   : > { %680 = vst [vmem:[%s1659_s16] sm:$0xff] %v602_v59  ;;  %v606_v3 = vadd.f32 %v605_v0, %v1687_v55  ;;  %v607_v4 = vpop.f32.mrb[3].mxu0  ;;  %696 = vst [vmem:[%s1659_s16 + $0x80] sm:$0xff] %v1693_v61  ;;  %v1704_v5 = vadd.f32 %v645_v2, %v1687_v55  ;;  %v647_v6 = vpop.f32.mrb[3].mxu1  ;;  %v780_v9 = vmul.f32 %v602_v59, %v602_v59 }
 0x177   : > { %681 = vst [vmem:[%s1659_s16 + $0x8] sm:$0xff] %v604_v63  ;;  %v608_v7 = vadd.f32 %v607_v4, %v1689_v56  ;;  %697 = vst [vmem:[%s1659_s16 + $0x88] sm:$0xff] %v1697_v1  ;;  %v1711_v8 = vadd.f32 %v647_v6, %v1689_v56  ;;  %v781_v12 = vmul.f32 %v604_v63, %v604_v63 }
 0x178   : > { %682 = vst [vmem:[%s1659_s16 + $0x10] sm:$0xff] %v606_v3  ;;  %v713_v10 = vadd.f32 %v606_v3, %v602_v59  ;;  %v782_v11 = vmul.f32 %v606_v3, %v606_v3  ;;  %698 = vst [vmem:[%s1659_s16 + $0x90] sm:$0xff] %v1704_v5 }
 0x179   : > { %683 = vst [vmem:[%s1659_s16 + $0x18] sm:$0xff] %v608_v7  ;;  %v734_v13 = vadd.f32 %v608_v7, %v604_v63  ;;  %v783_v14 = vmul.f32 %v608_v7, %v608_v7  ;;  %699 = vst [vmem:[%s1659_s16 + $0x98] sm:$0xff] %v1711_v8 }
 0x17a   : > { %v812_v15 = vadd.f32 %v782_v11, %v780_v9 }
 0x17b   : > { %v833_v16 = vadd.f32 %v783_v14, %v781_v12  ;;  %v611_v17 = vpop.f32.mrb[4].mxu0  ;;  %v651_v18 = vpop.f32.mrb[4].mxu1 }
 0x17c   : > { %v612_v19 = vadd.f32 %v611_v17, %v1687_v55  ;;  %v613_v20 = vpop.f32.mrb[5].mxu0  ;;  %v1721_v21 = vadd.f32 %v651_v18, %v1687_v55  ;;  %v653_v22 = vpop.f32.mrb[5].mxu1 }
 0x17d   : > { %v614_v23 = vadd.f32 %v613_v20, %v1689_v56  ;;  %v615_v24 = vpop.f32.mrb[6].mxu0  ;;  %v1725_v25 = vadd.f32 %v653_v22, %v1689_v56  ;;  %v655_v26 = vpop.f32.mrb[6].mxu1 }
 0x17e   : > { %684 = vst [vmem:[%s1659_s16 + $0x20] sm:$0xff] %v612_v19  ;;  %v714_v27 = vadd.f32 %v713_v10, %v612_v19  ;;  %v784_v28 = vmul.f32 %v612_v19, %v612_v19  ;;  %v616_v29 = vadd.f32 %v615_v24, %v1687_v55  ;;  %v617_v30 = vpop.f32.mrb[7].mxu0  ;;  %700 = vst [vmem:[%s1659_s16 + $0xa0] sm:$0xff] %v1721_v21  ;;  %v657_v31 = vpop.f32.mrb[7].mxu1 }
 0x17f   : > { %685 = vst [vmem:[%s1659_s16 + $0x28] sm:$0xff] %v614_v23  ;;  %v735_v32 = vadd.f32 %v734_v13, %v614_v23  ;;  %v785_v33 = vmul.f32 %v614_v23, %v614_v23  ;;  %v618_v34 = vadd.f32 %v617_v30, %v1689_v56  ;;  %701 = vst [vmem:[%s1659_s16 + $0xa8] sm:$0xff] %v1725_v25 }
 0x180   : > { %v813_v35 = vadd.f32 %v812_v15, %v784_v28  ;;  %686 = vst [vmem:[%s1659_s16 + $0x30] sm:$0xff] %v616_v29  ;;  %v715_v36 = vadd.f32 %v714_v27, %v616_v29  ;;  %v786_v37 = vmul.f32 %v616_v29, %v616_v29  ;;  %v1737_v38 = vadd.f32 %v655_v26, %v1687_v55 }
 0x181   : > { %v834_v39 = vadd.f32 %v833_v16, %v785_v33  ;;  %687 = vst [vmem:[%s1659_s16 + $0x38] sm:$0xff] %v618_v34  ;;  %v736_v40 = vadd.f32 %v735_v32, %v618_v34  ;;  %v787_v41 = vmul.f32 %v618_v34, %v618_v34  ;;  %v1741_v42 = vadd.f32 %v657_v31, %v1689_v56 }
 0x182   : > { %v814_v43 = vadd.f32 %v813_v35, %v786_v37  ;;  %702 = vst [vmem:[%s1659_s16 + $0xb0] sm:$0xff] %v1737_v38 }
 0x183   : > { %v835_v44 = vadd.f32 %v834_v39, %v787_v41  ;;  %v621_v45 = vpop.f32.mrb[8].mxu0  ;;  %703 = vst [vmem:[%s1659_s16 + $0xb8] sm:$0xff] %v1741_v42  ;;  %v661_v46 = vpop.f32.mrb[8].mxu1 }
 0x184   : > { %v622_v47 = vadd.f32 %v621_v45, %v1687_v55  ;;  %v623_v48 = vpop.f32.mrb[9].mxu0  ;;  %v1749_v49 = vadd.f32 %v661_v46, %v1687_v55  ;;  %v663_v52 = vpop.f32.mrb[9].mxu1 }
 0x185   : > { %v624_v53 = vadd.f32 %v623_v48, %v1689_v56  ;;  %v625_v54 = vpop.f32.mrb[10].mxu0  ;;  %v1753_v57 = vadd.f32 %v663_v52, %v1689_v56  ;;  %v665_v58 = vpop.f32.mrb[10].mxu1  ;;  %v797_v52 = vmul.f32 %v1697_v1, %v1697_v1 }
 0x186   : > { %688 = vst [vmem:[%s1659_s16 + $0x40] sm:$0xff] %v622_v47  ;;  %v716_v59 = vadd.f32 %v715_v36, %v622_v47  ;;  %v788_v60 = vmul.f32 %v622_v47, %v622_v47  ;;  %v626_v62 = vadd.f32 %v625_v54, %v1687_v55  ;;  %v627_v63 = vpop.f32.mrb[11].mxu0  ;;  %704 = vst [vmem:[%s1659_s16 + $0xc0] sm:$0xff] %v1749_v49  ;;  %v667_v0 = vpop.f32.mrb[11].mxu1 }
 0x187   : > { %689 = vst [vmem:[%s1659_s16 + $0x48] sm:$0xff] %v624_v53  ;;  %v737_v2 = vadd.f32 %v736_v40, %v624_v53  ;;  %v789_v3 = vmul.f32 %v624_v53, %v624_v53  ;;  %v628_v4 = vadd.f32 %v627_v63, %v1689_v56  ;;  %705 = vst [vmem:[%s1659_s16 + $0xc8] sm:$0xff] %v1753_v57 }
 0x188   : > { %v815_v6 = vadd.f32 %v814_v43, %v788_v60  ;;  %690 = vst [vmem:[%s1659_s16 + $0x50] sm:$0xff] %v626_v62  ;;  %v717_v7 = vadd.f32 %v716_v59, %v626_v62  ;;  %v790_v9 = vmul.f32 %v626_v62, %v626_v62  ;;  %v1765_v10 = vadd.f32 %v665_v58, %v1687_v55 }
 0x189   : > { %v836_v11 = vadd.f32 %v835_v44, %v789_v3  ;;  %691 = vst [vmem:[%s1659_s16 + $0x58] sm:$0xff] %v628_v4  ;;  %v738_v12 = vadd.f32 %v737_v2, %v628_v4  ;;  %v791_v13 = vmul.f32 %v628_v4, %v628_v4  ;;  %v1769_v14 = vadd.f32 %v667_v0, %v1689_v56 }
 0x18a   : > { %v816_v15 = vadd.f32 %v815_v6, %v790_v9  ;;  %706 = vst [vmem:[%s1659_s16 + $0xd0] sm:$0xff] %v1765_v10 }
 0x18b   : > { %v837_v16 = vadd.f32 %v836_v11, %v791_v13  ;;  %v631_v17 = vpop.f32.mrb[12].mxu0  ;;  %707 = vst [vmem:[%s1659_s16 + $0xd8] sm:$0xff] %v1769_v14  ;;  %v671_v18 = vpop.f32.mrb[12].mxu1 }
 0x18c   : > { %v632_v19 = vadd.f32 %v631_v17, %v1687_v55  ;;  %v633_v20 = vpop.f32.mrb[13].mxu0  ;;  %v1777_v22 = vadd.f32 %v671_v18, %v1687_v55  ;;  %v673_v23 = vpop.f32.mrb[13].mxu1 }
 0x18d   : > { %v634_v24 = vadd.f32 %v633_v20, %v1689_v56  ;;  %v635_v26 = vpop.f32.mrb[14].mxu0  ;;  %v1781_v27 = vadd.f32 %v673_v23, %v1689_v56  ;;  %v675_v28 = vpop.f32.mrb[14].mxu1 }
 0x18e   : > { %692 = vst [vmem:[%s1659_s16 + $0x60] sm:$0xff] %v632_v19  ;;  %v718_v29 = vadd.f32 %v717_v7, %v632_v19  ;;  %v792_v30 = vmul.f32 %v632_v19, %v632_v19  ;;  %v636_v31 = vadd.f32 %v635_v26, %v1687_v55  ;;  %v637_v32 = vpop.f32.mrb[15].mxu0  ;;  %708 = vst [vmem:[%s1659_s16 + $0xe0] sm:$0xff] %v1777_v22  ;;  %v677_v33 = vpop.f32.mrb[15].mxu1 }
 0x18f   : > { %693 = vst [vmem:[%s1659_s16 + $0x68] sm:$0xff] %v634_v24  ;;  %v739_v34 = vadd.f32 %v738_v12, %v634_v24  ;;  %v793_v35 = vmul.f32 %v634_v24, %v634_v24  ;;  %v638_v36 = vadd.f32 %v637_v32, %v1689_v56  ;;  %709 = vst [vmem:[%s1659_s16 + $0xe8] sm:$0xff] %v1781_v27 }
 0x190   : > { %v817_v37 = vadd.f32 %v816_v15, %v792_v30  ;;  %694 = vst [vmem:[%s1659_s16 + $0x70] sm:$0xff] %v636_v31  ;;  %v719_v39 = vadd.f32 %v718_v29, %v636_v31  ;;  %v794_v40 = vmul.f32 %v636_v31, %v636_v31  ;;  %v1795_v41 = vadd.f32 %v675_v28, %v1687_v55 }
 0x191   : > { %v838_v43 = vadd.f32 %v837_v16, %v793_v35  ;;  %695 = vst [vmem:[%s1659_s16 + $0x78] sm:$0xff] %v638_v36  ;;  %v740_v44 = vadd.f32 %v739_v34, %v638_v36  ;;  %v795_v45 = vmul.f32 %v638_v36, %v638_v36  ;;  %v1806_v46 = vadd.f32 %v677_v33, %v1689_v56 }
 0x192   : > { %v796_v55 = vmul.f32 %v1693_v61, %v1693_v61  ;;  %v720_v47 = vadd.f32 %v719_v39, %v1693_v61  ;;  %v818_v48 = vadd.f32 %v817_v37, %v794_v40  ;;  %710 = vst [vmem:[%s1659_s16 + $0xf0] sm:$0xff] %v1795_v41  ;;  %v798_v56 = vmul.f32 %v1704_v5, %v1704_v5 }
 0x193   : > { %v741_v53 = vadd.f32 %v740_v44, %v1697_v1  ;;  %v839_v54 = vadd.f32 %v838_v43, %v795_v45  ;;  %711 = vst [vmem:[%s1659_s16 + $0xf8] sm:$0xff] %v1806_v46 }
 0x194   : > { %v721_v58 = vadd.f32 %v720_v47, %v1704_v5  ;;  %v819_v59 = vadd.f32 %v818_v48, %v796_v55 }
 0x195   : > { %1342 = shalt.err (!%p1339_p10)
}
 0x196   : > { %s1343_s13 = scalar_lea.hbm %s1800_s29, 4096  ;;  %s1347_s24 = scalar_lea.hbm %s1962_s3, 8192 }
 0x197   : > { %p1344_p1 = scmp.ne.s32.totalorder %s1800_s29, %s1343_s13  ;;  %p1348_p12 = scmp.lt.u32.totalorder %s1800_s29, %s1962_s3 }
 0x198   : > { %p1349_p2 = scmp.lt.u32.totalorder %s1347_s24, %s1343_s13  ;;  %p1351_p6 = scmp.lt.u32.totalorder %s1343_s13, %s1800_s29 }
 0x199   : > { %p1345_p0 = pnand %p1344_p1, %p1593_p11 }
 0x19a   : > { %p1350_p4 = por %p1349_p2, %p1348_p12 }
 0x19b   : > { %p1346_p5 = pneg %p1345_p0 }
 0x19c   : > { %p1352_p8 = por %p1351_p6, %p1350_p4 }
 0x19e   : > { %p1353_p9 = pnand %p1352_p8, %p1346_p5 }
 0x1a0   : > { %1356 = shalt.err (!%p1353_p9)
}
 0x1a1   : > { %s1463_s7 = smov 256   ;;  %s1464_s15 = smov 16   ;;  %v799_v61 = vmul.f32 %v1711_v8, %v1711_v8  ;;  %v742_v1 = vadd.f32 %v741_v53, %v1711_v8  ;;  %v840_v5 = vadd.f32 %v839_v54, %v797_v52  ;;  %v800_v60 = vmul.f32 %v1721_v21, %v1721_v21 }
 0x1a2   : > { %1128 = dma.vmem_to_hbm [thread:$0]  (%p1593_p11), %s1802_s6, 4096, %s1800_s29, %s875_s28, %s1463_s7, %s1463_s7, %s1464_s15   ;;  %v820_v62 = vadd.f32 %v819_v59, %v798_v56  ;;  %v722_v63 = vadd.f32 %v721_v58, %v1721_v21  ;;  %v801_v0 = vmul.f32 %v1725_v25, %v1725_v25  ;;  %v802_v4 = vmul.f32 %v1737_v38, %v1737_v38 }
 0x1a3   : > { %v841_v2 = vadd.f32 %v840_v5, %v799_v61  ;;  %v743_v3 = vadd.f32 %v742_v1, %v1725_v25  ;;  %v803_v8 = vmul.f32 %v1741_v42, %v1741_v42  ;;  %v804_v12 = vmul.f32 %v1749_v49, %v1749_v49  ;;  %s1466_s9 = smov [#allocation8]   ;;  %s1467_s6 = smov [#allocation10]  }
 0x1a4   : > { %v723_v6 = vadd.f32 %v722_v63, %v1737_v38  ;;  %v821_v7 = vadd.f32 %v820_v62, %v800_v60  ;;  %v805_v15 = vmul.f32 %v1753_v57, %v1753_v57  ;;  %v806_v18 = vmul.f32 %v1765_v10, %v1765_v10  ;;  %s903_s23 = sshll.u32 %s1466_s9, 4  ;;  %s914_s29 = sshll.u32 %s1467_s6, 4  ;;  %s904_s23 = int_to_ptr.vmem [resolvable:$true] %s903_s23  ;;  %s1892_s29 = int_to_ptr.vmem [resolvable:$true] %s914_s29 }
 0x1a5   : > { %v744_v9 = vadd.f32 %v743_v3, %v1741_v42  ;;  %v842_v11 = vadd.f32 %v841_v2, %v801_v0  ;;  %v808_v42 = vmul.f32 %v1777_v22, %v1777_v22  ;;  %v809_v23 = vmul.f32 %v1781_v27, %v1781_v27  ;;  %s1357_s28 = scalar_lea.vmem %s904_s23, 32  ;;  %p1982_p13 = scmp.eq.s32.totalorder %s1519_s22, 1 }
 0x1a6   : > { %v724_v21 = vadd.f32 %v723_v6, %v1749_v49  ;;  %v822_v13 = vadd.f32 %v821_v7, %v802_v4  ;;  %v807_v49 = vmul.f32 %v1769_v14, %v1769_v14  ;;  %v810_v30 = vmul.f32 %v1795_v41, %v1795_v41  ;;  %v712_v6 = vld [vmem:[#allocation8] sm:$0x3]  ;;  %p1358_p11 = scmp.ne.s32.totalorder %s904_s23, %s1357_s28  ;;  %p1364_p10 = scmp.lt.s32.totalorder %s904_s23, %s904_s23 }
 0x1a7   : > { %v745_v25 = vadd.f32 %v744_v9, %v1753_v57  ;;  %v843_v16 = vadd.f32 %v842_v11, %v803_v8  ;;  %v1465_v40 = vmov 1966171168   ;;  %vm1886_vm1 = vcmp.lt.s32.totalorder %v317_v50, 256  ;;  %v779_v11 = vld [vmem:[#allocation10] sm:$0x3]  ;;  %p1365_p1 = scmp.lt.s32.totalorder %s1357_s28, %s1357_s28 }
 0x1a8   : > { %v823_v38 = vadd.f32 %v822_v13, %v804_v12  ;;  %v725_v17 = vadd.f32 %v724_v21, %v1765_v10  ;;  %v759_v43 = vunpack.c.l.s4 %v1465_v40  ;;  %p1359_p3 = pnand %p1358_p11, %p1982_p13 }
 0x1a9   : > { %v844_v19 = vadd.f32 %v843_v16, %v805_v15  ;;  %v746_v20 = vadd.f32 %v745_v25, %v1769_v14  ;;  %v811_v14 = vmul.f32 %v1806_v46, %v1806_v46  ;;  %p1366_p0 = por %p1365_p1, %p1364_p10 }
 0x1aa   : > { %v824_v57 = vadd.f32 %v823_v38, %v806_v18  ;;  %v726_v24 = vadd.f32 %v725_v17, %v1777_v22  ;;  %v760_v54 = vunpack.c.0.s8 %v759_v43  ;;  %p1360_p7 = pneg %p1359_p3 }
 0x1ab   : > { %v845_v26 = vadd.f32 %v844_v19, %v807_v49  ;;  %v747_v28 = vadd.f32 %v746_v20, %v1781_v27 }
 0x1ac   : > { %v825_v29 = vadd.f32 %v824_v57, %v808_v42  ;;  %v727_v10 = vadd.f32 %v726_v24, %v1795_v41  ;;  %v763_v62 = vsub.s32 %v760_v54, %v1680_v51  ;;  %p1367_p5 = pnand %p1366_p0, %p1360_p7 }
 0x1ad   : > { %v846_v31 = vadd.f32 %v845_v26, %v809_v23  ;;  %v748_v32 = vadd.f32 %v747_v28, %v1806_v46 }
 0x1ae   : > { %v728_v33 = vrot.slane %v727_v10, 4  ;;  %v826_v34 = vadd.f32 %v825_v29, %v810_v30 }
 0x1af   : > { %v749_v35 = vrot.slane %v748_v32, 4  ;;  %v847_v36 = vadd.f32 %v846_v31, %v811_v14 }
 0x1b0   : > { %v729_v22 = vadd.f32 %v728_v33, %v727_v10  ;;  %v827_v37 = vrot.slane %v826_v34, 4 }
 0x1b1   : > { %v750_v39 = vadd.f32 %v749_v35, %v748_v32  ;;  %v848_v27 = vrot.slane %v847_v36, 4 }
 0x1b2   : > { %v730_v44 = vrot.slane %v729_v22, 2  ;;  %v828_v45 = vadd.f32 %v827_v37, %v826_v34 }
 0x1b3   : > { %v751_v55 = vrot.slane %v750_v39, 2  ;;  %v849_v41 = vadd.f32 %v848_v27, %v847_v36 }
 0x1b4   : > { %v731_v47 = vadd.f32 %v730_v44, %v729_v22  ;;  %v829_v48 = vrot.slane %v828_v45, 2 }
 0x1b5   : > { %v752_v52 = vadd.f32 %v751_v55, %v750_v39  ;;  %v850_v53 = vrot.slane %v849_v41, 2 }
 0x1b6   : > { %v732_v46 = vrot.slane %v731_v47, 1  ;;  %v830_v56 = vadd.f32 %v829_v48, %v828_v45 }
 0x1b7   : > { %v753_v58 = vrot.slane %v752_v52, 1  ;;  %v851_v59 = vadd.f32 %v850_v53, %v849_v41 }
 0x1b8   : > { %v733_v61 = vadd.f32 %v732_v46, %v731_v47  ;;  %v831_v1 = vrot.slane %v830_v56, 1 }
 0x1b9   : > { %v754_v5 = vadd.f32 %v753_v58, %v752_v52  ;;  %v852_v60 = vrot.slane %v851_v59, 1 }
 0x1ba   : > { %v832_v63 = vadd.f32 %v831_v1, %v830_v56 }
 0x1bb   : > { %v757_v0 = vcombine.low %v733_v61, %v754_v5  ;;  %v853_v2 = vadd.f32 %v852_v60, %v851_v59 }
 0x1bd   : > { %v764_v3 = vrot.slane %v757_v0, %v763_v62  ;;  %v856_v4 = vcombine.low %v832_v63, %v853_v2 }
 0x1bf   : > { %v771_v7 = vrot.slane %v764_v3, %v763_v62  ;;  %v863_v8 = vrot.slane %v856_v4, %v763_v62 }
 0x1c1   : > { %v773_v51 = vadd.f32 %v771_v7, %v712_v6  ;;  %v870_v21 = vrot.slane %v863_v8, %v763_v62 }
 0x1c3   : > { %778 = vst.msk [vmem:[#allocation8] sm:$0x3] %vm1886_vm1, %v773_v51  ;;  %v872_v12 = vadd.f32 %v870_v21, %v779_v11 }
 0x1c4   : > { %1370 = shalt.err (!%p1367_p5)
}
 0x1c5   : > { %s1371_s11 = scalar_lea.hbm %s1963_s4, 32  ;;  %p1983_p2 = pmov %p1982_p13 }
 0x1c6   : > { %p1372_p12 = scmp.ne.s32.totalorder %s1963_s4, %s1371_s11  ;;  %p1377_p8 = scmp.lt.u32.totalorder %s1371_s11, %s1963_s4 }
 0x1c8   : > { %p1373_p4 = pnand %p1372_p12, %p1983_p2 }
 0x1ca   : > { %p1374_p6 = pneg %p1373_p4 }
 0x1cc   : > { %p1379_p9 = pnand %p1377_p8, %p1374_p6 }
 0x1ce   : > { %1382 = shalt.err (!%p1379_p9)
}
 0x1cf   : > { %p1984_p11 = pmov %p1983_p2  ;;  %873 = vst.msk [vmem:[#allocation10] sm:$0x3] %vm1886_vm1, %v872_v12  ;;  %s1383_s14 = scalar_lea.vmem %s1892_s29, 32 }
 0x1d0   : > { %p1384_p13 = scmp.ne.s32.totalorder %s1892_s29, %s1383_s14  ;;  %p1985_p3 = pmov %p1983_p2 }
 0x1d1   : > { %1130 = dma.vmem_to_hbm [thread:$0]  (%p1984_p11), %s904_s23, 32, %s1963_s4, [#allocation9]  }
 0x1d2   : > { %p1385_p7 = pnand %p1384_p13, %p1985_p3  ;;  %p1390_p1 = scmp.lt.s32.totalorder %s1892_s29, %s1892_s29 }
 0x1d3   : > { %p1391_p0 = scmp.lt.s32.totalorder %s1383_s14, %s1383_s14 }
 0x1d4   : > { %p1386_p10 = pneg %p1385_p7 }
 0x1d5   : > { %p1392_p5 = por %p1391_p0, %p1390_p1 }
 0x1d7   : > { %p1393_p12 = pnand %p1392_p5, %p1386_p10 }
 0x1d9   : > { %1396 = shalt.err (!%p1393_p12)
}
 0x1da   : > { %s1397_s9 = scalar_lea.hbm %s1964_s5, 32  ;;  %p1986_p4 = pmov %p1985_p3 }
 0x1db   : > { %p1398_p2 = scmp.ne.s32.totalorder %s1964_s5, %s1397_s9  ;;  %p1403_p9 = scmp.lt.u32.totalorder %s1397_s9, %s1964_s5 }
 0x1dd   : > { %p1399_p6 = pnand %p1398_p2, %p1986_p4 }
 0x1df   : > { %p1400_p8 = pneg %p1399_p6 }
 0x1e1   : > { %p1405_p11 = pnand %p1403_p9, %p1400_p8 }
 0x1e3   : > { %1408 = shalt.err (!%p1405_p11)
}
 0x1e4   : > { %p1987_p13 = pmov %p1985_p3 }
 0x1e6   : > { %1132 = dma.vmem_to_hbm [thread:$0]  (%p1987_p13), %s1892_s29, 32, %s1964_s5, [#allocation9]  }
 0x1e7   : > { %1434 = dma.done.wait (%p1985_p3), [#allocation9], 64   ;;  %p1988_p7 = pmov %p1985_p3 }
 0x1e9   : > { %1436 = vsyncadd (%p1988_p7), [#allocation9], 4294967232 }
 0x1ea PF: > { %s934_s12 = sand.u32 1, %s1443_s18   ;;  %p1989_p10 = scmp.ne.s32.totalorder %s1969_s25, 0 }
 0x1eb   : > { %p1990_p1 = scmp.ge.s32.totalorder %s1455_s21, 2  ;;  %s935_s13 = scalar_lea.sflag [#allocation4], %s934_s12 }
 0x1ed   : > { %p1147_p0 = pnand %p1990_p1, %p1989_p10 }
 0x1ef   : > { %1438 = dma.done.wait (!%p1147_p0), %s935_s13, 4096  }
 0x1f0   : > { %1440 = vsyncadd (!%p1147_p0), %s935_s13, 4294963200  ;;  %p21_p5 = scmp.ge.s32.totalorder %s1555_s30, 4   ;;  %s1991_s18 = smov %s1447_s19 }
 0x1f1   : > { %s1992_s19 = smov %s1451_s20  ;;  %s1993_s20 = smov %s1589_s8 }
 0x1f2   : > { %s1994_s21 = smov %s1555_s30  ;;  %23 = sbr.rel (!%p21_p5) target bundleno = 7 (0x7), region = 101 }
 0x1f9   :  { %940 = vsyncpa [#allocation3], 1 }
 0x1fa   :  { %942 = vsyncpa [#allocation3 + $0x1], 1 }
 0x1fb   :  { %943 = vsyncpa [#allocation6], 1 }
 0x1fc   :  { %944 = vsyncpa [#allocation4], 1 }
 0x1fd   :  { %946 = vsyncpa [#allocation4 + $0x1], 1 }
 0x1fe   :  { %947 = vsyncpa [#allocation9], 1 }

</bundles_post_ra>
